<compile_context>
chip_gen: v7x
topology: tpu7x:2x2x1
jax: 0.10.0
libtpu: 0.0.40
codegen_flags: <defaults>
</compile_context>

<pallas_src>
import functools

import jax
import jax.numpy as jnp
from jax.experimental import pallas as pl
from jax.experimental.pallas import tpu as pltpu

DROPOUT_P = 0.25


def _round_up(x, m):
    return ((x + m - 1) // m) * m


def _embed_dropout_kernel(ids_ref, table_ref, seed_ref, out_ref, *, p, apply_dropout):
    TB, D = out_ref.shape
    V1 = table_ref.shape[0]

    # ---- gather: one-hot (TB, V1) @ table (V1, D) on the MXU --------------
    ids = ids_ref[...]                                            # (TB, 1) int32
    vocab_iota = jax.lax.broadcasted_iota(jnp.int32, (TB, V1), 1)  # (TB, V1)
    one_hot = (vocab_iota == ids).astype(table_ref.dtype)          # (TB, V1)
    rows = jnp.dot(one_hot, table_ref[...],
                   preferred_element_type=jnp.float32)             # (TB, D) f32

    # ---- dropout (training only): integer-threshold mask ------------------
    if apply_dropout and p > 0.0:
        b_u = pl.program_id(0).astype(jnp.uint32)
        t_u = jax.lax.broadcasted_iota(jnp.int32, (TB, D), 0).astype(jnp.uint32)
        d_u = jax.lax.broadcasted_iota(jnp.int32, (TB, D), 1).astype(jnp.uint32)
        seed_u = seed_ref[0].astype(jnp.uint32)

        # Global element index, mixed with the seed.
        idx = (b_u * jnp.uint32(TB) + t_u) * jnp.uint32(D) + d_u
        x = idx + seed_u * jnp.uint32(0x9E3779B9)
        # lowbias32 integer hash (good avalanche on consecutive inputs).
        x = x ^ (x >> 16)
        x = x * jnp.uint32(0x7FEB352D)
        x = x ^ (x >> 15)
        x = x * jnp.uint32(0x846CA68B)
        x = x ^ (x >> 16)

        threshold = jnp.uint32(min(int(p * (2.0 ** 32)), 2 ** 32 - 1))
        keep = x >= threshold                       # P(keep) = 1 - p
        scale = jnp.float32(1.0 / (1.0 - p))
        rows = jnp.where(keep, rows * scale, jnp.float32(0.0))

    out_ref[...] = rows.astype(out_ref.dtype)


def embed_layer_forward(x, embedding_table, seed=0, dropout_p=DROPOUT_P,
                        training=True, block_tokens=256):
    """Equivalent of Embed_Layer.forward: Dropout(p)(Embedding(x))."""
    B, S = x.shape
    V1, D = embedding_table.shape
    N = B * S

    # Pad vocab rows to a multiple of 8 (sublane) for a clean MXU contraction.
    V1p = _round_up(V1, 8)
    if V1p != V1:
        table = jnp.zeros((V1p, D), embedding_table.dtype).at[:V1].set(embedding_table)
    else:
        table = embedding_table

    # Tokens per grid step: (8,128)-aligned output block, big to amortize
    # per-step overhead.
    TB = min(int(block_tokens), _round_up(N, 8))
    TB = _round_up(TB, 8)
    n_blocks = -(-N // TB)
    N_pad = n_blocks * TB

    ids = x.reshape(N).astype(jnp.int32)
    if N_pad != N:
        ids = jnp.pad(ids, (0, N_pad - N))          # pad with id 0 (valid row)
    ids2d = ids.reshape(N_pad, 1)                   # token ids along sublanes
    seed_arr = jnp.asarray([seed], dtype=jnp.int32)

    kernel = functools.partial(_embed_dropout_kernel,
                               p=float(dropout_p),
                               apply_dropout=bool(training))

    out = pl.pallas_call(
        kernel,
        out_shape=jax.ShapeDtypeStruct((N_pad, D), embedding_table.dtype),
        grid=(n_blocks,),
        in_specs=[
            # Per-block token ids (TB, 1).
            pl.BlockSpec((TB, 1), lambda i: (i, 0)),
            # Whole embedding table, constant block index -> VMEM-resident.
            pl.BlockSpec((V1p, D), lambda i: (0, 0)),
            # Dropout seed scalar in SMEM.
            pl.BlockSpec(memory_space=pltpu.MemorySpace.SMEM),
        ],
        out_specs=pl.BlockSpec((TB, D), lambda i: (i, 0)),
        compiler_params=pltpu.CompilerParams(
            dimension_semantics=("parallel",)),
    )(ids2d, table, seed_arr)

    return out[:N].reshape(B, S, D)


if __name__ == "__main__":
    # Small, lane-friendly shapes consistent with the module:
    #   vocab_size=50 -> table has vocab_size+1 = 51 rows; embedding_dim=128.
    vocab_size = 50
    embedding_dim = 128
    B, S = 2, 8

    key = jax.random.PRNGKey(0)
    k_emb, k_idx = jax.random.split(key)

    # Deterministic "pretrained" embedding matrix (stands in for embedding_matrix).
    embedding_matrix = jax.random.normal(
        k_emb, (vocab_size + 1, embedding_dim), dtype=jnp.float32)
    # Integer token ids in [0, vocab_size].
    x = jax.random.randint(k_idx, (B, S), 0, vocab_size + 1, dtype=jnp.int32)

    # --- eval-mode path (no dropout): exact gather check -------------------
    out_eval = embed_layer_forward(x, embedding_matrix, seed=0,
                                   dropout_p=DROPOUT_P, training=False)
    out_eval = jax.block_until_ready(out_eval)
    assert out_eval.shape == (B, S, embedding_dim)
    assert bool(jnp.allclose(out_eval, embedding_matrix[x], rtol=1e-5, atol=1e-5))

    # --- training path (dropout applied, matching the torch forward) -------
    out = embed_layer_forward(x, embedding_matrix, seed=0,
                              dropout_p=DROPOUT_P, training=True)
    out = jax.block_until_ready(out)
    assert out.shape == (B, S, embedding_dim)
    assert out.dtype == jnp.float32

    # Sanity: every surviving element equals the gathered row scaled by 1/(1-p).
    gathered = embedding_matrix[x] / (1.0 - DROPOUT_P)
    mask = out != 0.0
    assert bool(jnp.allclose(jnp.where(mask, out, 0.0),
                             jnp.where(mask, gathered, 0.0),
                             rtol=1e-5, atol=1e-5))
    # Some elements should be dropped and some kept.
    kept_frac = float(jnp.mean(mask.astype(jnp.float32)))
    assert 0.5 < kept_frac < 0.95

    print("KERNEL_OK")
</pallas_src>

<mosaic_0001>
module attributes {stable_mosaic.version = 11 : i64} {
  func.func @_embed_dropout_kernel(%arg0: i32, %arg1: memref<16x1xi32, #tpu.memory_space<vmem>>, %arg2: memref<56x128xf32, #tpu.memory_space<vmem>>, %arg3: memref<1xi32, #tpu.memory_space<smem>>, %arg4: memref<16x128xf32, #tpu.memory_space<vmem>>) attributes {dimension_semantics = [#tpu.dimension_semantics<parallel>], iteration_bounds = array<i64: 1>, scalar_prefetch = 0 : i64, scratch_operands = 0 : i64, tpu.core_type = #tpu.core_type<tc>, window_params = [{transform_indices = @transform_0, window_bounds = array<i64: 16, 1>}, {pipeline_mode = #tpu.pipeline_mode<synchronous>, transform_indices = @transform_1, window_bounds = array<i64: 56, 128>}, {transform_indices = @transform_2, window_bounds = array<i64: 1>}, {transform_indices = @transform_3, window_bounds = array<i64: 16, 128>}]} {
    %c0 = arith.constant 0 : index
    %c0_0 = arith.constant 0 : index
    %0 = vector.load %arg1[%c0, %c0_0] : memref<16x1xi32, #tpu.memory_space<vmem>>, vector<16x1xi32>
    %1 = tpu.iota {dimensions = array<i32: 1>} : vector<16x56xi32>
    %2 = vector.broadcast %0 : vector<16x1xi32> to vector<16x56xi32>
    %3 = arith.cmpi eq, %1, %2 : vector<16x56xi32>
    %4 = arith.extui %3 : vector<16x56xi1> to vector<16x56xi32>
    %5 = arith.sitofp %4 : vector<16x56xi32> to vector<16x56xf32>
    %c0_1 = arith.constant 0 : index
    %c0_2 = arith.constant 0 : index
    %6 = vector.load %arg2[%c0_1, %c0_2] : memref<56x128xf32, #tpu.memory_space<vmem>>, vector<56x128xf32>
    %cst = arith.constant dense<0.000000e+00> : vector<16x128xf32>
    %7 = tpu.matmul %5, %6, %cst {dimension_numbers = #tpu.dot_dimension_numbers<[1], [0], [0], [1], [0, 0, 1, 1], [], []>} : vector<16x56xf32>, vector<56x128xf32>, vector<16x128xf32> -> vector<16x128xf32>
    %c0_3 = arith.constant 0 : index
    %c0_4 = arith.constant 0 : index
    %8 = vector.load %arg4[%c0_3, %c0_4] : memref<16x128xf32, #tpu.memory_space<vmem>>, vector<16x128xf32>
    tpu.vector_store %arg4[%c0_3, %c0_4], %7 {strides = array<i32>} : memref<16x128xf32, #tpu.memory_space<vmem>>, vector<16x128xf32>,
    return
  }
  func.func @transform_0(%arg0: i32) -> (i32, i32) {
    %c0_i32 = arith.constant 0 : i32
    %c0_i32_0 = arith.constant 0 : i32
    return %arg0, %c0_i32 : i32, i32
  }
  func.func @transform_1(%arg0: i32) -> (i32, i32) {
    %c0_i32 = arith.constant 0 : i32
    %c0_i32_0 = arith.constant 0 : i32
    %c0_i32_1 = arith.constant 0 : i32
    return %c0_i32, %c0_i32_0 : i32, i32
  }
  func.func @transform_2(%arg0: i32) -> i32 {
    %c0_i32 = arith.constant 0 : i32
    %c0_i32_0 = arith.constant 0 : i32
    return %c0_i32 : i32
  }
  func.func @transform_3(%arg0: i32) -> (i32, i32) {
    %c0_i32 = arith.constant 0 : i32
    %c0_i32_0 = arith.constant 0 : i32
    return %arg0, %c0_i32 : i32, i32
  }
}

</mosaic_0001>

<bundles_post_ra>
// kernel: tpu_custom_call.1
= control target key start
LH: loop header
LB: loop body
LE: loop exit
PB: predicated region body
PF: predicated region fallthrough
CT: control target
= control target key end

     0   :  { %9 = vsyncpa [#allocation4], 0  ;;  %s313_s0 = inlined_call_operand.vmem [shape: s32[16,1], index: 0, kind: input, shape index: {}]   ;;  %s314_s1 = inlined_call_operand.hbm [shape: f32[56,128], index: 1, kind: input, shape index: {}]   ;;  %s315_s2 = inlined_call_operand.<no memory space> [shape: s32[1], index: 2, kind: input, shape index: {}]   ;;  %s316_s3 = inlined_call_operand.hbm [shape: f32[16,128], index: 3, kind: output, shape index: {}]  }
   0x1   :  { %10 = vsyncpa [#allocation5], 0  ;;  %s251_s12 = smov [#allocation3]   ;;  %s203_s16 = scalar_lea.hbm %s314_s1, 896 }
   0x2   :  { %s18_s13 = sshll.u32 %s251_s12, 4  ;;  %p204_p0 = scmp.ne.s32.totalorder %s314_s1, %s203_s16  ;;  %s19_s13 = int_to_ptr.vmem [resolvable:$true] %s18_s13 }
   0x3   :  { %p207_p1 = scmp.lt.u32.totalorder %s203_s16, %s314_s1 }
   0x5   :  { %p209_p2 = pnand %p207_p1, %p204_p0 }
   0x7   :  { %212 = shalt.err (!%p209_p2)
}
   0x8   :  { %s213_s2 = scalar_lea.vmem %s19_s13, 896  ;;  %p218_p4 = scmp.lt.s32.totalorder %s19_s13, %s19_s13 }
   0x9   :  { %p214_p3 = scmp.ne.s32.totalorder %s19_s13, %s213_s2  ;;  %p219_p5 = scmp.lt.s32.totalorder %s213_s2, %s213_s2 }
   0xb   :  { %p220_p6 = por %p219_p5, %p218_p4 }
   0xd   :  { %p221_p7 = pnand %p220_p6, %p214_p3 }
   0xf   :  { %224 = shalt.err (!%p221_p7)
}
  0x10   :  { %s252_s21 = smov 128   ;;  %s253_s22 = smov 8  }
  0x11   :  { %24 = dma.hbm_to_vmem [thread:$0]  %s314_s1, 896, %s19_s13, [#allocation4], %s252_s21, %s252_s21, %s253_s22  }
  0x12   :  { %247 = dma.done.wait [#allocation4], 896  }
  0x13   :  { %248 = vsyncadd [#allocation4], 4294966400  ;;  %v254_v0 = vmov 0   ;;  %v30_v1 = vld [vmem:[%s313_s0] sm:$0xff]  ;;  %v47_v3 = vld [vmem:[#allocation3 + $0x8] sm:$0xff]  ;;  %v32_v13 = vlaneseq  ;;  %vm53_vm0 = vcmask 457728  }
  0x14   :  { %202 = vset.pattern.permute.xlu0 %v254_v0  ;;  %v46_v2 = vld [vmem:[#allocation3] sm:$0xff]  ;;  %v48_v4 = vld [vmem:[#allocation3 + $0x10] sm:$0xff]  ;;  %v49_v5 = vld [vmem:[#allocation3 + $0x18] sm:$0xff]  ;;  %v255_v16 = vmov 0.0  }
  0x15   :  { %35 = vperm.xlu0 %202, %v30_v1   ;;  %v31_v6 = vld [vmem:[%s313_s0 + $0x8] sm:$0xff]  ;;  %v184_v7 = vpack.c.bf16 %v47_v3, %v46_v2  ;;  %v188_v8 = vpack.c.bf16 %v49_v5, %v48_v4  ;;  %v50_v9 = vld [vmem:[#allocation3 + $0x20] sm:$0xff]  ;;  %v52_v12 = vld [vmem:[#allocation3 + $0x30] sm:$0xff]  ;;  %v33_v14 = vand.u32 127, %v32_v13  ;;  %s256_s0 = smov [#allocation6]  }
  0x16   :  { %v51_v10 = vld [vmem:[#allocation3 + $0x28] sm:$0xff]  ;;  %s142_s1 = sshll.u32 %s256_s0, 4  ;;  %s143_s1 = int_to_ptr.vmem [resolvable:$true] %s142_s1 }
  0x17   :  { %185 = vmatprep.subr.bf16.mxu0 %v184_v7  ;;  %v192_v11 = vpack.c.bf16 %v51_v10, %v50_v9  ;;  %s225_s29 = scalar_lea.vmem %s143_s1, 256  ;;  %p230_p9 = scmp.lt.s32.totalorder %s143_s1, %s143_s1 }
  0x18   :  { %187 = vmatpush3.bf16.msra.mxu0 %v184_v7  ;;  %p226_p8 = scmp.ne.s32.totalorder %s143_s1, %s225_s29  ;;  %p231_p10 = scmp.lt.s32.totalorder %s225_s29, %s225_s29 }
  0x19   :  { %38 = vperm.xlu0 %202, %v31_v6   ;;  %189 = vmatprep.subr.bf16.mxu0 %v188_v8 }
  0x1a   :  { %p232_p11 = por %p231_p10, %p230_p9 }
  0x1c   :  { %191 = vmatpush3.bf16.msra.mxu0 %v188_v8  ;;  %p233_p12 = pnand %p232_p11, %p226_p8 }
  0x1d   :  { %193 = vmatprep.subr.bf16.mxu0 %v192_v11 }
  0x20   :  { %195 = vmatpush3.bf16.msra.mxu0 %v192_v11 }
  0x21   :  { %179 = vmatprep.subr.mxu0 %v52_v12 }
  0x24   :  { %180 = vmatpush3.msra.mxu0 %v52_v12 }
  0x94   :  { %v36_v15 = vpop.permute.xlu0 %35 }
  0x95   :  { %vm40_vm1 = vcmp.eq.s32.totalorder %v33_v14, %v36_v15 }
  0x96   :  { %v154_v17 = vsel %vm40_vm1, 1.0, %v255_v16 }
  0x97   :  { %181 = vmatprep.mubr.msk.f32.mxu0 %vm53_vm0, %v154_v17 }
  0x98   :  { %v39_v18 = vpop.permute.xlu0 %38 }
  0x99   :  { %vm41_vm2 = vcmp.eq.s32.totalorder %v33_v14, %v39_v18 }
  0x9a   :  { %v155_v19 = vsel %vm41_vm2, 1.0, %v255_v16 }
  0x9b   :  { %182 = vmatmul.mubr.msk.f32.vlgmr.msra.gmra.mrb[0].mxu0 %vm53_vm0, %v155_v19 }
 0x16e   :  { %v183_v20 = vpop.f32.mrb[0].mxu0 }
 0x16f   :  { %136 = vst [vmem:[#allocation6 + $0x8] sm:$0xff] %v183_v20  ;;  %v126_v21 = vpop.f32.mrb[1].mxu0 }
 0x170   :  { %135 = vst [vmem:[#allocation6] sm:$0xff] %v126_v21 }
 0x171   :  { %236 = shalt.err (!%p233_p12)
}
 0x172   :  { %s237_s5 = scalar_lea.hbm %s316_s3, 256 }
 0x173   :  { %p238_p13 = scmp.ne.s32.totalorder %s316_s3, %s237_s5  ;;  %p241_p0 = scmp.lt.u32.totalorder %s237_s5, %s316_s3 }
 0x175   :  { %p243_p1 = pnand %p241_p0, %p238_p13 }
 0x177   :  { %246 = shalt.err (!%p243_p1)
}
 0x178   :  { %148 = dma.vmem_to_hbm [thread:$0]  %s143_s1, 256, %s316_s3, [#allocation5], %s252_s21, %s252_s21, %s253_s22  }
 0x179   :  { %249 = dma.done.wait [#allocation5], 256  }
 0x17a   :  { %250 = vsyncadd [#allocation5], 4294967040 }
 0x17b   :  { %152 = vsyncpa [#allocation4], 1 }
 0x17c   :  { %153 = vsyncpa [#allocation5], 1 }

</bundles_post_ra>
